<compile_context>
chip_gen: v6e
topology: v6e:2x2x1
jax: 0.10.0
libtpu: 0.0.40
codegen_flags: <defaults>
</compile_context>

<pallas_src>
import jax
import jax.numpy as jnp
from jax.experimental import pallas as pl
from jax.experimental.pallas import tpu as pltpu


# ----------------------------------------------------------------------------
# Pallas kernels
# ----------------------------------------------------------------------------

def _make_fused_layer_kernel(ndst, hidden, out_width, relu):
    """One kernel per GNN layer.

    For every destination node type d the wrapper pre-builds (one-time param
    transform, hoisted out of the forward):
        LHS_d = [x_dst | agg_et1 | agg_et2 | ...]          (rows, (1+k)*H)
        RHS_d = [sum_et W_self_et ; W_neigh_et1 ; ...]     ((1+k)*H, H)
        b_d   = sum_et b_et                                (1, H)
    so the whole to_hetero(sum) SAGE update for a node type is ONE MXU dot
    with a 2-3x wider K than per-edge-type dots.  The per-dst results are
    packed along the lane axis into a single (row_tile, out_width>=128) block
    so the HBM writeback is one unmasked lane-dense store per grid step.
    """
    def kernel(*refs):
        ins = refs[:3 * ndst]
        o_ref = refs[3 * ndst]
        for d in range(ndst):
            lhs_ref, w_ref, b_ref = ins[3 * d:3 * d + 3]
            h = jnp.dot(lhs_ref[...], w_ref[...],
                        preferred_element_type=jnp.float32)   # MXU, f32 acc
            h = h + b_ref[...].astype(jnp.float32)            # f32 epilogue
            if relu:                                          # (v5e-safe: VPU f32)
                h = jnp.maximum(h, 0.0)
            o_ref[:, d * hidden:(d + 1) * hidden] = h.astype(o_ref.dtype)
        pad = out_width - ndst * hidden
        if pad > 0:
            o_ref[:, ndst * hidden:] = jnp.zeros(
                (o_ref.shape[0], pad), o_ref.dtype)
    return kernel


def _classifier_kernel(tidx_ref, eidx_ref, xt_ref, xe_ref, o_ref,
                       ts_ref, es_ref):
    # Classifier.forward: pred[e] = sum_d x_team[t[e], d] * x_expert[i[e], d]
    # One grid step handles TILE_E edges: gather the TILE_E rows of each table
    # into VMEM scratch with a partially-unrolled dynamic-row copy loop, then
    # one dense (TILE_E, H) VPU multiply and one MXU contraction that lands
    # directly in a lane-dense (1, TILE_E) output tile (distinct block per
    # grid step -> the edge-tile axis is legally "parallel").
    tile_e = ts_ref.shape[0]
    base = pl.program_id(0) * tile_e

    def gather(j, carry):
        t = tidx_ref[base + j]
        i = eidx_ref[base + j]
        ts_ref[pl.ds(j, 1), :] = xt_ref[pl.ds(t, 1), :]
        es_ref[pl.ds(j, 1), :] = xe_ref[pl.ds(i, 1), :]
        return carry

    jax.lax.fori_loop(0, tile_e, gather, 0, unroll=8)

    prod = ts_ref[...] * es_ref[...]                       # (TILE_E, H) VPU
    ones = jnp.ones((1, prod.shape[1]), jnp.float32)
    # contract H of ones(1,H) against H of prod(TILE_E,H) -> (1, TILE_E),
    # lane-dense, no sublane->lane relayout needed before the store.
    o_ref[...] = jax.lax.dot_general(
        ones, prod, (((1,), (1,)), ((), ())),
        preferred_element_type=jnp.float32)


# ----------------------------------------------------------------------------
# Plain-JAX glue (scatter-mean aggregation, grouping, param prep)
# ----------------------------------------------------------------------------

def mean_aggregate(x_src, edge_index, num_dst):
    # TODO(synk): scatter-mean neighbor aggregation kept in plain JAX glue
    # (data-dependent scatter; no clean Pallas TPU scatter primitive used here).
    src, dst = edge_index[0], edge_index[1]
    msg = x_src[src]
    summed = jax.ops.segment_sum(msg, dst, num_segments=num_dst)
    cnt = jax.ops.segment_sum(jnp.ones((src.shape[0],), jnp.float32), dst,
                              num_segments=num_dst)
    return summed / jnp.maximum(cnt, 1.0)[:, None]


def group_edge_types_by_dst(edge_types):
    groups = {}
    for et in edge_types:
        groups.setdefault(et[2], []).append(et)
    return groups


def prepare_fused_gnn_params(gnn_layers, dst_groups, compute_dtype):
    """One-time param transform (hoisted out of the forward): fold the
    to_hetero(sum) wiring into concatenated weights / summed biases per dst
    node type, and cast the MXU operands to compute_dtype (bf16 on v6e/v7x)."""
    fused = []
    for layer in gnn_layers:
        per = {}
        for dt, ets in dst_groups.items():
            w_self = sum(layer[et]['w_self'] for et in ets)
            w = jnp.concatenate(
                [w_self] + [layer[et]['w_neigh'] for et in ets], axis=0)
            b = sum(layer[et]['b'] for et in ets)
            per[dt] = {'ets': tuple(ets),
                       'W': w.astype(compute_dtype),
                       'b': b.astype(jnp.float32)}
        fused.append(per)
    return fused


def pick_row_tile(n_max, cap=512):
    # big tiles amortize the ~0.35 us/step grid overhead; keep >=2 grid steps
    # so both v7x TensorCores get work, and keep sublane (8) alignment.
    half = -(-n_max // 2)
    rt = 8 * (-(-half // 8))
    return max(8, min(cap, rt))


# ----------------------------------------------------------------------------
# Pallas wrappers
# ----------------------------------------------------------------------------

def fused_hetero_sage_layer(x_dict_padded, edge_index_dict, layer_fused, relu,
                            n_pad, row_tile):
    """One pallas_call for the whole hetero layer (all edge / dst types).

    All node-feature tensors arrive already padded to a shared n_pad row count
    (padding is done once per forward, not per layer), so layer outputs feed
    the next layer / mean_aggregate without an HBM slice->re-pad round trip.
    TODO(synk): at production node counts raise vmem_limit_bytes via
    CompilerParams and size row_tile for v7x's 64 MiB physical VMEM.
    """
    dst_types = list(layer_fused.keys())
    ndst = len(dst_types)
    hidden = layer_fused[dst_types[0]]['W'].shape[1]
    compute_dtype = layer_fused[dst_types[0]]['W'].dtype

    inputs, in_specs = [], []
    for dt in dst_types:
        p = layer_fused[dt]
        x_dst = x_dict_padded[dt]
        aggs = [mean_aggregate(x_dict_padded[et[0]], edge_index_dict[et], n_pad)
                for et in p['ets']]
        lhs = jnp.concatenate([x_dst] + aggs, axis=1).astype(compute_dtype)
        k = lhs.shape[1]
        inputs += [lhs, p['W'], p['b']]
        in_specs += [
            pl.BlockSpec((row_tile, k), lambda i: (i, 0)),   # tiled node rows
            pl.BlockSpec((k, hidden), lambda i: (0, 0)),     # weights resident
            pl.BlockSpec((1, hidden), lambda i: (0, 0)),     # bias resident
        ]

    out_width = 128 * (-(-(ndst * hidden) // 128))           # lane-dense pack
    out = pl.pallas_call(
        _make_fused_layer_kernel(ndst, hidden, out_width, relu),
        grid=(n_pad // row_tile,),
        in_specs=in_specs,
        out_specs=pl.BlockSpec((row_tile, out_width), lambda i: (i, 0)),
        out_shape=jax.ShapeDtypeStruct((n_pad, out_width), jnp.float32),
        compiler_params=pltpu.CompilerParams(
            dimension_semantics=("parallel",)),   # row tiles are independent
    )(*inputs)
    # un-pack per dst type; rows >= true node counts hold padding garbage and
    # are never consumed (edge indices are clamped to valid rows downstream).
    return {dt: out[:, d * hidden:(d + 1) * hidden]
            for d, dt in enumerate(dst_types)}


def classifier_pallas(x_expert, x_team, edge_label_index, n_expert, n_team,
                      tile_e=128):
    # TODO(synk): node-feature tables are kept VMEM-resident (fine at these
    # sizes); at production node counts stream node blocks for v7x's 64 MiB.
    E = edge_label_index.shape[1]
    E_pad = tile_e * (-(-E // tile_e))
    H = x_team.shape[1]
    # clamp indices: dynamic VMEM row gathers have no bounds check.
    tidx = jnp.clip(edge_label_index[0].astype(jnp.int32), 0, n_team - 1)
    eidx = jnp.clip(edge_label_index[1].astype(jnp.int32), 0, n_expert - 1)
    tidx = jnp.pad(tidx, (0, E_pad - E))
    eidx = jnp.pad(eidx, (0, E_pad - E))

    grid_spec = pltpu.PrefetchScalarGridSpec(
        num_scalar_prefetch=2,
        grid=(E_pad // tile_e,),
        in_specs=[
            pl.BlockSpec(x_team.shape, lambda e, t, i: (0, 0)),
            pl.BlockSpec(x_expert.shape, lambda e, t, i: (0, 0)),
        ],
        out_specs=pl.BlockSpec((1, tile_e), lambda e, t, i: (0, e)),
        scratch_shapes=[pltpu.VMEM((tile_e, H), jnp.float32),
                        pltpu.VMEM((tile_e, H), jnp.float32)],
    )
    out = pl.pallas_call(
        _classifier_kernel,
        grid_spec=grid_spec,
        out_shape=jax.ShapeDtypeStruct((1, E_pad), jnp.float32),
        compiler_params=pltpu.CompilerParams(
            dimension_semantics=("parallel",)),   # each tile owns its block
    )(tidx, eidx, x_team, x_expert)
    return out[0, :E]


# ----------------------------------------------------------------------------
# Model forward (Pallas path + pure-JAX reference path)
# ----------------------------------------------------------------------------

def hetero_sage_layer_ref(x_dict, edge_index_dict, layer_params):
    out = {}
    for et, ei in edge_index_dict.items():
        src_t, _, dst_t = et
        agg = mean_aggregate(x_dict[src_t], ei, x_dict[dst_t].shape[0])
        p = layer_params[et]
        o = x_dict[dst_t] @ p['w_self'] + agg @ p['w_neigh'] + p['b']
        out[dst_t] = o if dst_t not in out else out[dst_t] + o
    return out


def model_forward(params, data, use_pallas=True,
                  compute_dtype=jnp.float32, fused_gnn=None):
    # Embedding lookups (gather glue).
    x_dict = {
        'expert': params['expert_emb'][data['expert_node_id']],
        'skill':  params['skill_emb'][data['skill_node_id']],
        'team':   params['team_emb'][data['team_node_id']],
    }
    eid = data['edge_index_dict']
    # TODO(synk): the GS/GIN/GAT/... class bodies are not given in the source;
    # a standard 2-layer SAGEConv(mean) + ReLU stack (gnn_model='gs',
    # graph_type='STE') with to_hetero(sum) wiring is assumed.
    if not use_pallas:
        h = hetero_sage_layer_ref(x_dict, eid, params['gnn'][0])
        h = {k: jnp.maximum(v, 0.0) for k, v in h.items()}
        h = hetero_sage_layer_ref(h, eid, params['gnn'][1])
        eli = data['edge_label_index']
        edge_feat_team = h['team'][eli[0]]
        edge_feat_expert = h['expert'][eli[1]]
        return (edge_feat_expert * edge_feat_team).sum(axis=-1)

    true_n = {t: x.shape[0] for t, x in x_dict.items()}
    n_max = max(true_n.values())
    row_tile = pick_row_tile(n_max)
    n_pad = row_tile * (-(-n_max // row_tile))
    # pad once; both layers and mean_aggregate work on the shared padded count.
    xp = {t: jnp.pad(x, ((0, n_pad - x.shape[0]), (0, 0)))
          for t, x in x_dict.items()}

    if fused_gnn is None:
        dst_groups = group_edge_types_by_dst(eid.keys())
        fused_gnn = prepare_fused_gnn_params(params['gnn'], dst_groups,
                                             compute_dtype)

    h = fused_hetero_sage_layer(xp, eid, fused_gnn[0], True, n_pad, row_tile)
    h = fused_hetero_sage_layer(h, eid, fused_gnn[1], False, n_pad, row_tile)
    return classifier_pallas(h['expert'], h['team'], data['edge_label_index'],
                             true_n['expert'], true_n['team'])


# ----------------------------------------------------------------------------
# Deterministic parameter / data construction
# ----------------------------------------------------------------------------

def build(hidden=32, n_skill=8, n_expert=16, n_team=8, n_edges=24, n_label=8):
    key = jax.random.PRNGKey(0)
    ks = iter(jax.random.split(key, 64))

    def nrm(shape):
        return (0.1 * jax.random.normal(next(ks), shape)).astype(jnp.float32)

    edge_types = [
        ('expert', 'has', 'skill'),
        ('skill', 'rev_has', 'expert'),
        ('team', 'includes', 'expert'),
        ('expert', 'rev_includes', 'team'),
    ]

    gnn = []
    for _ in range(2):
        layer = {}
        for et in edge_types:
            layer[et] = {'w_self': nrm((hidden, hidden)),
                         'w_neigh': nrm((hidden, hidden)),
                         'b': nrm((1, hidden))}
        gnn.append(layer)

    params = {
        'skill_emb': nrm((n_skill, hidden)),
        'expert_emb': nrm((n_expert, hidden)),
        'team_emb': nrm((n_team, hidden)),
        'gnn': gnn,
    }

    eid = {}
    has = jnp.stack([
        jax.random.randint(next(ks), (n_edges,), 0, n_expert),
        jax.random.randint(next(ks), (n_edges,), 0, n_skill)])
    inc = jnp.stack([
        jax.random.randint(next(ks), (n_edges,), 0, n_team),
        jax.random.randint(next(ks), (n_edges,), 0, n_expert)])
    eid[('expert', 'has', 'skill')] = has
    eid[('skill', 'rev_has', 'expert')] = has[::-1]
    eid[('team', 'includes', 'expert')] = inc
    eid[('expert', 'rev_includes', 'team')] = inc[::-1]

    edge_label_index = jnp.stack([
        jax.random.randint(next(ks), (n_label,), 0, n_team),
        jax.random.randint(next(ks), (n_label,), 0, n_expert)])

    data = {
        'skill_node_id': jnp.arange(n_skill),
        'expert_node_id': jnp.arange(n_expert),
        'team_node_id': jnp.arange(n_team),
        'edge_index_dict': eid,
        'edge_label_index': edge_label_index,
    }
    return params, data


if __name__ == "__main__":
    params, data = build()

    # hoisted one-time param transforms (feedback: no per-forward weight prep)
    dst_groups = group_edge_types_by_dst(data['edge_index_dict'].keys())
    fused_f32 = prepare_fused_gnn_params(params['gnn'], dst_groups, jnp.float32)
    fused_bf16 = prepare_fused_gnn_params(params['gnn'], dst_groups, jnp.bfloat16)

    ref = jax.block_until_ready(model_forward(params, data, use_pallas=False))

    # f32 MXU path: strict numerical match against the pure-JAX reference.
    pred_f32 = jax.block_until_ready(
        model_forward(params, data, use_pallas=True,
                      compute_dtype=jnp.float32, fused_gnn=fused_f32))
    assert pred_f32.shape == ref.shape == (data['edge_label_index'].shape[1],)
    assert jnp.allclose(pred_f32, ref, atol=1e-4, rtol=1e-4)

    # production config for v6e/v7x: bf16 MXU operands, f32 accumulate/epilogue.
    pred_bf16 = jax.block_until_ready(
        model_forward(params, data, use_pallas=True,
                      compute_dtype=jnp.bfloat16, fused_gnn=fused_bf16))
    assert pred_bf16.shape == ref.shape
    assert jnp.allclose(pred_bf16, ref, atol=5e-2, rtol=5e-2)

    print("KERNEL_OK")
</pallas_src>

<mosaic_0001>
module attributes {stable_mosaic.version = 11 : i64} {
  func.func @kernel(%arg0: i32, %arg1: memref<8x64xf32, #tpu.memory_space<vmem>>, %arg2: memref<64x32xf32, #tpu.memory_space<vmem>>, %arg3: memref<1x32xf32, #tpu.memory_space<vmem>>, %arg4: memref<8x96xf32, #tpu.memory_space<vmem>>, %arg5: memref<96x32xf32, #tpu.memory_space<vmem>>, %arg6: memref<1x32xf32, #tpu.memory_space<vmem>>, %arg7: memref<8x64xf32, #tpu.memory_space<vmem>>, %arg8: memref<64x32xf32, #tpu.memory_space<vmem>>, %arg9: memref<1x32xf32, #tpu.memory_space<vmem>>, %arg10: memref<8x128xf32, #tpu.memory_space<vmem>>) attributes {dimension_semantics = [#tpu.dimension_semantics<parallel>], iteration_bounds = array<i64: 2>, scalar_prefetch = 0 : i64, scratch_operands = 0 : i64, tpu.core_type = #tpu.core_type<tc>, window_params = [{transform_indices = @transform_0, window_bounds = array<i64: 8, 64>}, {pipeline_mode = #tpu.pipeline_mode<synchronous>, transform_indices = @transform_1, window_bounds = array<i64: 64, 32>}, {pipeline_mode = #tpu.pipeline_mode<synchronous>, transform_indices = @transform_2, window_bounds = array<i64: 1, 32>}, {transform_indices = @transform_3, window_bounds = array<i64: 8, 96>}, {pipeline_mode = #tpu.pipeline_mode<synchronous>, transform_indices = @transform_4, window_bounds = array<i64: 96, 32>}, {pipeline_mode = #tpu.pipeline_mode<synchronous>, transform_indices = @transform_5, window_bounds = array<i64: 1, 32>}, {transform_indices = @transform_6, window_bounds = array<i64: 8, 64>}, {pipeline_mode = #tpu.pipeline_mode<synchronous>, transform_indices = @transform_7, window_bounds = array<i64: 64, 32>}, {pipeline_mode = #tpu.pipeline_mode<synchronous>, transform_indices = @transform_8, window_bounds = array<i64: 1, 32>}, {transform_indices = @transform_9, window_bounds = array<i64: 8, 128>}]} {
    %c0 = arith.constant 0 : index
    %c0_0 = arith.constant 0 : index
    %0 = vector.load %arg1[%c0, %c0_0] : memref<8x64xf32, #tpu.memory_space<vmem>>, vector<8x64xf32>
    %c0_1 = arith.constant 0 : index
    %c0_2 = arith.constant 0 : index
    %1 = vector.load %arg2[%c0_1, %c0_2] : memref<64x32xf32, #tpu.memory_space<vmem>>, vector<64x32xf32>
    %cst = arith.constant dense<0.000000e+00> : vector<8x32xf32>
    %2 = tpu.matmul %0, %1, %cst {dimension_numbers = #tpu.dot_dimension_numbers<[1], [0], [0], [1], [0, 0, 1, 1], [], []>} : vector<8x64xf32>, vector<64x32xf32>, vector<8x32xf32> -> vector<8x32xf32>
    %c0_3 = arith.constant 0 : index
    %c0_4 = arith.constant 0 : index
    %3 = vector.load %arg3[%c0_3, %c0_4] : memref<1x32xf32, #tpu.memory_space<vmem>>, vector<1x32xf32>
    %4 = vector.broadcast %3 : vector<1x32xf32> to vector<8x32xf32>
    %5 = arith.addf %2, %4 : vector<8x32xf32>
    %cst_5 = arith.constant 0.000000e+00 : f32
    %6 = vector.broadcast %cst_5 : f32 to vector<8x32xf32>
    %7 = arith.maximumf %5, %6 : vector<8x32xf32>
    %c0_6 = arith.constant 0 : index
    %c0_7 = arith.constant 0 : index
    %8 = vector.load %arg10[%c0_6, %c0_7] : memref<8x128xf32, #tpu.memory_space<vmem>>, vector<8x32xf32>
    tpu.vector_store %arg10[%c0_6, %c0_7], %7 {strides = array<i32>} : memref<8x128xf32, #tpu.memory_space<vmem>>, vector<8x32xf32>,
    %c0_8 = arith.constant 0 : index
    %c0_9 = arith.constant 0 : index
    %9 = vector.load %arg4[%c0_8, %c0_9] : memref<8x96xf32, #tpu.memory_space<vmem>>, vector<8x96xf32>
    %c0_10 = arith.constant 0 : index
    %c0_11 = arith.constant 0 : index
    %10 = vector.load %arg5[%c0_10, %c0_11] : memref<96x32xf32, #tpu.memory_space<vmem>>, vector<96x32xf32>
    %cst_12 = arith.constant dense<0.000000e+00> : vector<8x32xf32>
    %11 = tpu.matmul %9, %10, %cst_12 {dimension_numbers = #tpu.dot_dimension_numbers<[1], [0], [0], [1], [0, 0, 1, 1], [], []>} : vector<8x96xf32>, vector<96x32xf32>, vector<8x32xf32> -> vector<8x32xf32>
    %c0_13 = arith.constant 0 : index
    %c0_14 = arith.constant 0 : index
    %12 = vector.load %arg6[%c0_13, %c0_14] : memref<1x32xf32, #tpu.memory_space<vmem>>, vector<1x32xf32>
    %13 = vector.broadcast %12 : vector<1x32xf32> to vector<8x32xf32>
    %14 = arith.addf %11, %13 : vector<8x32xf32>
    %cst_15 = arith.constant 0.000000e+00 : f32
    %15 = vector.broadcast %cst_15 : f32 to vector<8x32xf32>
    %16 = arith.maximumf %14, %15 : vector<8x32xf32>
    %c0_16 = arith.constant 0 : index
    %c32 = arith.constant 32 : index
    %17 = vector.load %arg10[%c0_16, %c32] : memref<8x128xf32, #tpu.memory_space<vmem>>, vector<8x32xf32>
    tpu.vector_store %arg10[%c0_16, %c32], %16 {strides = array<i32>} : memref<8x128xf32, #tpu.memory_space<vmem>>, vector<8x32xf32>,
    %c0_17 = arith.constant 0 : index
    %c0_18 = arith.constant 0 : index
    %18 = vector.load %arg7[%c0_17, %c0_18] : memref<8x64xf32, #tpu.memory_space<vmem>>, vector<8x64xf32>
    %c0_19 = arith.constant 0 : index
    %c0_20 = arith.constant 0 : index
    %19 = vector.load %arg8[%c0_19, %c0_20] : memref<64x32xf32, #tpu.memory_space<vmem>>, vector<64x32xf32>
    %cst_21 = arith.constant dense<0.000000e+00> : vector<8x32xf32>
    %20 = tpu.matmul %18, %19, %cst_21 {dimension_numbers = #tpu.dot_dimension_numbers<[1], [0], [0], [1], [0, 0, 1, 1], [], []>} : vector<8x64xf32>, vector<64x32xf32>, vector<8x32xf32> -> vector<8x32xf32>
    %c0_22 = arith.constant 0 : index
    %c0_23 = arith.constant 0 : index
    %21 = vector.load %arg9[%c0_22, %c0_23] : memref<1x32xf32, #tpu.memory_space<vmem>>, vector<1x32xf32>
    %22 = vector.broadcast %21 : vector<1x32xf32> to vector<8x32xf32>
    %23 = arith.addf %20, %22 : vector<8x32xf32>
    %cst_24 = arith.constant 0.000000e+00 : f32
    %24 = vector.broadcast %cst_24 : f32 to vector<8x32xf32>
    %25 = arith.maximumf %23, %24 : vector<8x32xf32>
    %c0_25 = arith.constant 0 : index
    %c64 = arith.constant 64 : index
    %26 = vector.load %arg10[%c0_25, %c64] : memref<8x128xf32, #tpu.memory_space<vmem>>, vector<8x32xf32>
    tpu.vector_store %arg10[%c0_25, %c64], %25 {strides = array<i32>} : memref<8x128xf32, #tpu.memory_space<vmem>>, vector<8x32xf32>,
    %cst_26 = arith.constant 0.000000e+00 : f32
    %27 = vector.broadcast %cst_26 : f32 to vector<8x32xf32>
    %c0_27 = arith.constant 0 : index
    %c96 = arith.constant 96 : index
    %28 = vector.load %arg10[%c0_27, %c96] : memref<8x128xf32, #tpu.memory_space<vmem>>, vector<8x32xf32>
    tpu.vector_store %arg10[%c0_27, %c96], %27 {strides = array<i32>} : memref<8x128xf32, #tpu.memory_space<vmem>>, vector<8x32xf32>,
    return
  }
  func.func @transform_0(%arg0: i32) -> (i32, i32) {
    %c0_i32 = arith.constant 0 : i32
    %c0_i32_0 = arith.constant 0 : i32
    return %arg0, %c0_i32 : i32, i32
  }
  func.func @transform_1(%arg0: i32) -> (i32, i32) {
    %c0_i32 = arith.constant 0 : i32
    %c0_i32_0 = arith.constant 0 : i32
    %c0_i32_1 = arith.constant 0 : i32
    return %c0_i32, %c0_i32_0 : i32, i32
  }
  func.func @transform_2(%arg0: i32) -> (i32, i32) {
    %c0_i32 = arith.constant 0 : i32
    %c0_i32_0 = arith.constant 0 : i32
    %c0_i32_1 = arith.constant 0 : i32
    return %c0_i32, %c0_i32_0 : i32, i32
  }
  func.func @transform_3(%arg0: i32) -> (i32, i32) {
    %c0_i32 = arith.constant 0 : i32
    %c0_i32_0 = arith.constant 0 : i32
    return %arg0, %c0_i32 : i32, i32
  }
  func.func @transform_4(%arg0: i32) -> (i32, i32) {
    %c0_i32 = arith.constant 0 : i32
    %c0_i32_0 = arith.constant 0 : i32
    %c0_i32_1 = arith.constant 0 : i32
    return %c0_i32, %c0_i32_0 : i32, i32
  }
  func.func @transform_5(%arg0: i32) -> (i32, i32) {
    %c0_i32 = arith.constant 0 : i32
    %c0_i32_0 = arith.constant 0 : i32
    %c0_i32_1 = arith.constant 0 : i32
    return %c0_i32, %c0_i32_0 : i32, i32
  }
  func.func @transform_6(%arg0: i32) -> (i32, i32) {
    %c0_i32 = arith.constant 0 : i32
    %c0_i32_0 = arith.constant 0 : i32
    return %arg0, %c0_i32 : i32, i32
  }
  func.func @transform_7(%arg0: i32) -> (i32, i32) {
    %c0_i32 = arith.constant 0 : i32
    %c0_i32_0 = arith.constant 0 : i32
    %c0_i32_1 = arith.constant 0 : i32
    return %c0_i32, %c0_i32_0 : i32, i32
  }
  func.func @transform_8(%arg0: i32) -> (i32, i32) {
    %c0_i32 = arith.constant 0 : i32
    %c0_i32_0 = arith.constant 0 : i32
    %c0_i32_1 = arith.constant 0 : i32
    return %c0_i32, %c0_i32_0 : i32, i32
  }
  func.func @transform_9(%arg0: i32) -> (i32, i32) {
    %c0_i32 = arith.constant 0 : i32
    %c0_i32_0 = arith.constant 0 : i32
    return %arg0, %c0_i32 : i32, i32
  }
}

</mosaic_0001>

<bundles_post_ra>
// kernel: tpu_custom_call.1
= control target key start
LH: loop header
LB: loop body
LE: loop exit
PB: predicated region body
PF: predicated region fallthrough
CT: control target
= control target key end

     0   :  { %14 = vsyncpa [#allocation3], 0  ;;  %s1265_s0 = inlined_call_operand.vmem [shape: f32[16,64], index: 0, kind: input, shape index: {}]   ;;  %s1266_s1 = inlined_call_operand.vmem [shape: f32[64,32], index: 1, kind: input, shape index: {}]   ;;  %s1267_s2 = inlined_call_operand.vmem [shape: f32[1,32], index: 2, kind: input, shape index: {}]   ;;  %s1268_s3 = inlined_call_operand.vmem [shape: f32[16,96], index: 3, kind: input, shape index: {}]   ;;  %s1269_s4 = inlined_call_operand.vmem [shape: f32[96,32], index: 4, kind: input, shape index: {}]   ;;  %s1270_s5 = inlined_call_operand.vmem [shape: f32[1,32], index: 5, kind: input, shape index: {}]   ;;  %s1271_s6 = inlined_call_operand.vmem [shape: f32[16,64], index: 6, kind: input, shape index: {}]   ;;  %s1272_s7 = inlined_call_operand.vmem [shape: f32[64,32], index: 7, kind: input, shape index: {}]   ;;  %s1273_s8 = inlined_call_operand.vmem [shape: f32[1,32], index: 8, kind: input, shape index: {}]   ;;  %s1274_s9 = inlined_call_operand.hbm [shape: f32[16,128], index: 9, kind: output, shape index: {}]  }
   0x1   :  { %16 = vsyncpa [#allocation3 + $0x1], 0  ;;  %s1025_s30 = smov 0   ;;  %s1027_s10 = smov 0  }
   0x2   :  { %s1029_s11 = smov 0   ;;  %s1031_s12 = smov 0  }
   0x3 LB: > { %s1046_s13 = sadd.s32 4294967295, %s968_s12   ;;  %s751_s14 = sadd.s32 4294967294, %s968_s12   ;;  %s968_s12 = sphi %s1031_s12, %s1280_s12   ;;  %s964_s11 = sphi %s1029_s11, %s1279_s11   ;;  %s960_s10 = sphi %s1027_s10, %s1278_s10   ;;  %s956_s30 = sphi %s1025_s30, %s1277_s30  }
   0x4   : > { %s1050_s15 = sadd.s32 1, %s968_s12   ;;  %s233_s16 = sadd.s32 1, %s964_s11 }
   0x5   : > { %s230_s17 = ssub.s32 %s968_s12, %s1050_s15  ;;  %p243_p0 = scmp.ne.s32.totalorder %s964_s11, %s960_s10 }
   0x6   : > { %p231_p1 = scmp.eq.s32.totalorder %s230_s17, 0  ;;  %p244_p2 = scmp.eq.s32.totalorder %s1046_s13, 1 }
   0x7   : > { %p249_p3 = scmp.ne.s32.totalorder %s960_s10, %s956_s30  ;;  %p250_p4 = scmp.eq.s32.totalorder %s751_s14, 1 }
   0x8   : > { %s1061_s18 = scalar_select %p231_p1, %s964_s11, %s233_s16  }
   0x9   : > { %p1063_p5 = por %p244_p2, %p243_p0  ;;  %p1067_p6 = por %p250_p4, %p249_p3 }
   0xa   : > { %p754_p7 = scmp.ge.s32.totalorder %s968_s12, 1  ;;  %p307_p8 = scmp.lt.s32.totalorder %s968_s12, 3 }
   0xc   : > { %p308_p9 = pnand %p754_p7, %p307_p8 }
   0xd   : > { %p350_p10 = scmp.lt.s32.totalorder (!%p308_p9), %s1046_s13, 1  ;;  %s347_s17 = sand.u32 (!%p308_p9), 1, %s960_s10  }
   0xe   : > { %311 = sbr.rel (%p308_p9) target bundleno = 379 (0x17b), region = 56  ;;  %s973_s29 = smov (!%p308_p9), 64  }
   0xf   : > { %s766_s16 = sshll.u32 (!%p308_p9), %s1046_s13, 7  ;;  %s655_s25 = scalar_lea.sflag (!%p308_p9), [#allocation3], %s347_s17 }
  0x10   : > { %s1227_s24 = scalar_lea.hbm (!%p308_p9), %s1274_s9, %s766_s16 }
  0x13   : > { %v370_v0 = vld [vmem:[%s1266_s1 + $0x38] sm:$0xff]  ;;  %v970_v2 = vmov 0.0   ;;  %v369_v3 = vld [vmem:[%s1266_s1 + $0x30] sm:$0xff]  ;;  %v368_v5 = vld [vmem:[%s1266_s1 + $0x28] sm:$0xff]  ;;  %s351_s21 = scalar_select %p350_p10, %s1046_s13, 1  ;;  %vm971_vm0 = vmmov 0  }
  0x14   : > { %v467_v1 = vld [vmem:[%s1269_s4 + $0x58] sm:$0xff]  ;;  %800 = vmatprep.subr.mxu0 %v970_v2  ;;  %819 = vmatprep.subr.mxu1 %v970_v2  ;;  %v466_v4 = vld [vmem:[%s1269_s4 + $0x50] sm:$0xff]  ;;  %v465_v6 = vld [vmem:[%s1269_s4 + $0x48] sm:$0xff]  ;;  %vm378_vm1 = vcmask 523264   ;;  %vm475_vm2 = vcmask 785408   ;;  %vm453_vm3 = vcmask 261120  }
  0x15   : > { %801 = vmatpush3.msra.mxu0 %v370_v0  ;;  %820 = vmatpush3.msra.mxu1 %v467_v1  ;;  %v367_v7 = vld [vmem:[%s1266_s1 + $0x20] sm:$0xff]  ;;  %v366_v9 = vld [vmem:[%s1266_s1 + $0x18] sm:$0xff]  ;;  %s1115_s14 = sshll.u32 %s351_s21, 3  ;;  %v365_v11 = vld [vmem:[%s1266_s1 + $0x10] sm:$0xff]  ;;  %vm554_vm4 = vcmask 523520   ;;  %vm650_vm5 = vcmask 785920  }
  0x16   : > { %802 = vmatprep.subr.mxu0 %v970_v2  ;;  %821 = vmatprep.subr.mxu1 %v970_v2  ;;  %v464_v8 = vld [vmem:[%s1269_s4 + $0x40] sm:$0xff]  ;;  %v463_v10 = vld [vmem:[%s1269_s4 + $0x38] sm:$0xff]  ;;  %v462_v12 = vld [vmem:[%s1269_s4 + $0x30] sm:$0xff]  ;;  %s353_s27 = scalar_lea.vmem %s1265_s0, %s1115_s14  ;;  %s357_s28 = scalar_lea.vmem %s1268_s3, %s1115_s14  ;;  %vm652_vm6 = vcmask 1048320  }
  0x17   : > { %803 = vmatpush3.msra.mxu0 %v369_v3  ;;  %822 = vmatpush3.msra.mxu1 %v466_v4  ;;  %v364_v13 = vld [vmem:[%s1266_s1 + $0x8] sm:$0xff]  ;;  %v363_v15 = vld [vmem:[%s1266_s1] sm:$0xff]  ;;  %v564_v18 = vld [vmem:[%s1272_s7 + $0x38] sm:$0xff]  ;;  %s974_s13 = smov [#allocation2]  }
  0x18   : > { %804 = vmatprep.subr.mxu0 %v970_v2  ;;  %823 = vmatprep.subr.mxu1 %v970_v2  ;;  %v461_v14 = vld [vmem:[%s1269_s4 + $0x28] sm:$0xff]  ;;  %v362_v16 = vld [vmem:[%s353_s27] sm:$0xff]  ;;  %v459_v19 = vld [vmem:[%s1269_s4 + $0x18] sm:$0xff]  ;;  %s912_s27 = sshll.u32 %s974_s13, 4  ;;  %s913_s27 = int_to_ptr.vmem [resolvable:$false] %s912_s27 }
  0x19   : > { %805 = vmatpush3.msra.mxu0 %v368_v5  ;;  %824 = vmatpush3.msra.mxu1 %v465_v6  ;;  %v460_v17 = vld [vmem:[%s1269_s4 + $0x20] sm:$0xff]  ;;  %v563_v20 = vld [vmem:[%s1272_s7 + $0x30] sm:$0xff]  ;;  %v562_v22 = vld [vmem:[%s1272_s7 + $0x28] sm:$0xff] }
  0x1a   : > { %806 = vmatprep.subr.mxu0 %v970_v2  ;;  %825 = vmatprep.subr.mxu1 %v970_v2  ;;  %v458_v21 = vld [vmem:[%s1269_s4 + $0x10] sm:$0xff]  ;;  %v457_v23 = vld [vmem:[%s1269_s4 + $0x8] sm:$0xff]  ;;  %v561_v24 = vld [vmem:[%s1272_s7 + $0x20] sm:$0xff] }
  0x1b   : > { %807 = vmatpush3.msra.mxu0 %v367_v7  ;;  %826 = vmatpush3.msra.mxu1 %v464_v8  ;;  %v456_v25 = vld [vmem:[%s1269_s4] sm:$0xff]  ;;  %v560_v26 = vld [vmem:[%s1272_s7 + $0x18] sm:$0xff]  ;;  %v559_v28 = vld [vmem:[%s1272_s7 + $0x10] sm:$0xff] }
  0x1c   : > { %808 = vmatprep.subr.mxu0 %v970_v2  ;;  %827 = vmatprep.subr.mxu1 %v970_v2  ;;  %v455_v27 = vld [vmem:[%s357_s28] sm:$0xff]  ;;  %v558_v29 = vld [vmem:[%s1272_s7 + $0x8] sm:$0xff]  ;;  %s361_s28 = scalar_lea.vmem %s1271_s6, %s1115_s14  ;;  %s755_s14 = sshll.u32 %s347_s17, 3 }
  0x1d   : > { %809 = vmatpush3.msra.mxu0 %v366_v9  ;;  %828 = vmatpush3.msra.mxu1 %v463_v10  ;;  %v557_v30 = vld [vmem:[%s1272_s7] sm:$0xff]  ;;  %s349_s21 = scalar_lea.vmem [#allocation2], %s755_s14 }
  0x1e   : > { %810 = vmatprep.subr.mxu0 %v970_v2  ;;  %829 = vmatprep.subr.mxu1 %v970_v2  ;;  %v556_v31 = vld [vmem:[%s361_s28] sm:$0xff]  ;;  %s972_s28 = smov 32   ;;  %s668_s22 = sshll.u32 %s349_s21, 4  ;;  %s669_s22 = int_to_ptr.vmem [resolvable:$true] %s668_s22 }
  0x1f   : > { %811 = vmatpush3.msra.mxu0 %v365_v11  ;;  %830 = vmatpush3.msra.mxu1 %v462_v12  ;;  %v759_v32 = vld [vmem:[%s1267_s2] ss:$0 sm:$0xff]  ;;  %s908_s26 = scalar_lea.vmem %s669_s22, 128  ;;  %p915_p0 = scmp.lt.s32.totalorder %s669_s22, %s913_s27 }
  0x20   : > { %812 = vmatprep.subr.mxu0 %v970_v2  ;;  %831 = vmatprep.subr.mxu1 %v970_v2  ;;  %v761_v37 = vld [vmem:[%s1270_s5] ss:$0 sm:$0xff]  ;;  %p909_p11 = scmp.ne.s32.totalorder %s669_s22, %s908_s26 }
  0x21   : > { %813 = vmatpush3.msra.mxu0 %v364_v13  ;;  %816 = vmatprep.mubr.msk.f32.mxu0 %vm971_vm0, %v970_v2  ;;  %v763_v42 = vld [vmem:[%s1273_s8] ss:$0 sm:$0xff] }
  0x22   : > { %814 = vmatprep.subr.mxu0 %v970_v2  ;;  %832 = vmatpush3.msra.mxu1 %v461_v14  ;;  %p910_p12 = pnand %p909_p11, %p1063_p5 }
  0x23   : > { %815 = vmatpush3.msra.mxu0 %v363_v15  ;;  %833 = vmatprep.subr.mxu1 %v970_v2 }
  0x24   : > { %817 = vmatmul.mubr.msk.f32.vlgmr.msra.gmra.mxu0 %vm378_vm1, %v362_v16  ;;  %846 = vmatprep.subr.mxu0 %v970_v2  ;;  %p911_p13 = pneg %p910_p12 }
  0x25   : > { %834 = vmatpush3.msra.mxu1 %v460_v17  ;;  %847 = vmatpush3.msra.mxu0 %v564_v18 }
  0x26   : > { %835 = vmatprep.subr.mxu1 %v970_v2  ;;  %848 = vmatprep.subr.mxu0 %v970_v2 }
  0x27   : > { %836 = vmatpush3.msra.mxu1 %v459_v19  ;;  %849 = vmatpush3.msra.mxu0 %v563_v20 }
  0x28   : > { %837 = vmatprep.subr.mxu1 %v970_v2  ;;  %850 = vmatprep.subr.mxu0 %v970_v2 }
  0x29   : > { %838 = vmatpush3.msra.mxu1 %v458_v21  ;;  %851 = vmatpush3.msra.mxu0 %v562_v22 }
  0x2a   : > { %839 = vmatprep.subr.mxu1 %v970_v2  ;;  %852 = vmatprep.subr.mxu0 %v970_v2 }
  0x2b   : > { %840 = vmatpush3.msra.mxu1 %v457_v23  ;;  %853 = vmatpush3.msra.mxu0 %v561_v24 }
  0x2c   : > { %841 = vmatprep.subr.mxu1 %v970_v2  ;;  %854 = vmatprep.subr.mxu0 %v970_v2 }
  0x2d   : > { %842 = vmatpush3.msra.mxu1 %v456_v25  ;;  %843 = vmatprep.mubr.msk.f32.mxu1 %vm971_vm0, %v970_v2 }
  0x2e   : > { %855 = vmatpush3.msra.mxu0 %v560_v26  ;;  %844 = vmatmul.mubr.msk.f32.vlgmr.msra.gmra.mxu1 %vm475_vm2, %v455_v27 }
  0x2f   : > { %856 = vmatprep.subr.mxu0 %v970_v2  ;;  %862 = vmatprep.mubr.msk.f32.mxu0 %vm971_vm0, %v970_v2 }
  0x30   : > { %857 = vmatpush3.msra.mxu0 %v559_v28 }
  0x31   : > { %858 = vmatprep.subr.mxu0 %v970_v2 }
  0x32   : > { %859 = vmatpush3.msra.mxu0 %v558_v29 }
  0x33   : > { %860 = vmatprep.subr.mxu0 %v970_v2 }
  0x34   : > { %861 = vmatpush3.msra.mxu0 %v557_v30 }
  0x35   : > { %863 = vmatmul.mubr.msk.f32.vlgmr.msra.gmra.mxu0 %vm378_vm1, %v556_v31 }
  0xe4   : > { %v448_v33 = vpop.f32.mrf.mxu0 }
  0xe5   : > { %v449_v34 = vadd.f32 %v759_v32, %v448_v33 }
  0xe6   : > { %v818_v35 = vpop.f32.mrf.mxu0 }
  0xe7   : > { %v452_v36 = vmax.f32 %v449_v34, 0.0 }
  0xe9   : > { %454 = vst.msk [vmem:[%s349_s21] sm:$0xff] %vm453_vm3, %v452_v36 }
  0xee   : > { %v545_v38 = vpop.f32.mrf.mxu1 }
  0xef   : > { %v546_v39 = vadd.f32 %v761_v37, %v545_v38 }
  0xf0   : > { %v845_v40 = vpop.f32.mrf.mxu1 }
  0xf1   : > { %v549_v41 = vmax.f32 %v546_v39, 0.0 }
  0xf3   : > { %551 = vrot.lane.b32.xlu0 %v549_v41, %s972_s28  ;;  %s914_s28 = scalar_lea.vmem %s913_s27, 256 }
  0xf4   : > { %p916_p1 = scmp.lt.s32.totalorder %s914_s28, %s908_s26 }
  0xf5   : > { %v641_v43 = vpop.f32.mrf.mxu0 }
  0xf6   : > { %v642_v44 = vadd.f32 %v763_v42, %v641_v43  ;;  %p917_p2 = por %p916_p1, %p915_p0 }
  0xf7   : > { %v864_v45 = vpop.f32.mrf.mxu0 }
  0xf8   : > { %v645_v46 = vmax.f32 %v642_v44, 0.0  ;;  %p918_p3 = pnand %p917_p2, %p911_p13 }
  0xfa   : > { %647 = vrot.lane.b32.xlu0 %v645_v46, %s973_s29 }
 0x165   : > { %v552_v47 = vpop.permute.xlu0 %551 }
 0x166   : > { %555 = vst.msk [vmem:[%s349_s21] sm:$0xff] %vm554_vm4, %v552_v47 }
 0x16c   : > { %v648_v48 = vpop.permute.xlu0 %647 }
 0x16d   : > { %651 = vst.msk [vmem:[%s349_s21] sm:$0xff] %vm650_vm5, %v648_v48 }
 0x16e   : > { %653 = vst.msk [vmem:[%s349_s21] sm:$0xff] %vm652_vm6, %v970_v2 }
 0x16f   : > { %921 = shalt.err (!%p918_p3)
}
 0x170   : > { %s922_s21 = scalar_lea.hbm %s1227_s24, 128  ;;  %s926_s16 = scalar_lea.hbm %s1274_s9, 256 }
 0x171   : > { %p923_p4 = scmp.ne.s32.totalorder %s1227_s24, %s922_s21  ;;  %p927_p9 = scmp.lt.s32.totalorder %s1227_s24, %s1274_s9 }
 0x172   : > { %p928_p10 = scmp.lt.s32.totalorder %s926_s16, %s922_s21 }
 0x173   : > { %p924_p7 = pnand %p923_p4, %p1063_p5 }
 0x174   : > { %p929_p11 = por %p928_p10, %p927_p9 }
 0x175   : > { %p925_p8 = pneg %p924_p7 }
 0x177   : > { %p930_p12 = pnand %p929_p11, %p925_p8 }
 0x179   : > { %933 = shalt.err (!%p930_p12)
}
 0x17a   : > { %865 = dma.vmem_to_hbm [thread:$0]  (%p1063_p5), %s669_s22, 128, %s1227_s24, %s655_s25  }
 0x17b PF: > { %p871_p13 = scmp.ge.s32.totalorder %s968_s12, 2  ;;  %s680_s26 = sand.u32 1, %s956_s30  }
 0x17c   : > { %s681_s13 = scalar_lea.sflag [#allocation3], %s680_s26 }
 0x17d   : > { %p868_p0 = pnand %p871_p13, %p1067_p6 }
 0x17f   : > { %p869_p1 = pneg %p868_p0 }
 0x181   : > { %951 = dma.done.wait (%p869_p1), %s681_s13, 128  }
 0x182   : > { %953 = vsyncadd (%p869_p1), %s681_s13, 4294967168  ;;  %p19_p2 = scmp.ge.s32.totalorder %s1050_s15, 4   ;;  %s1277_s30 = smov %s960_s10 }
 0x183   : > { %s1278_s10 = smov %s964_s11  ;;  %s1279_s11 = smov %s1061_s18 }
 0x184   : > { %s1280_s12 = smov %s1050_s15  ;;  %21 = sbr.rel (!%p19_p2) target bundleno = 3 (0x3), region = 97 }
 0x189   :  { %686 = vsyncpa [#allocation3], 1 }
 0x18a   :  { %688 = vsyncpa [#allocation3 + $0x1], 1 }

</bundles_post_ra>
